<compile_context>
chip_gen: v5e
topology: v5e:2x2
jax: 0.10.0
libtpu: 0.0.40
codegen_flags: <defaults>
</compile_context>

<pallas_src>
import jax
import jax.numpy as jnp
from jax.experimental import pallas as pl
from jax.experimental.pallas import tpu as pltpu

BOARD = 64      # squares on the board
SEQ = BOARD + 1  # +1 for the value token


def board_embed_kernel(x_ref, w_ref, bias_pos_ref, val_row_ref, out_ref):
    # x_ref:        (TB, 64, F)   TB batch elements' board features
    # w_ref:        (F, H)        projection weight (F x H)
    # bias_pos_ref: (64, H)       bias + pos_embed[1:65]   (precomputed)
    # val_row_ref:  (1, H)        val_token + pos_embed[0] (precomputed)
    # out_ref:      (TB, 65, H)
    tb = x_ref.shape[0]
    f = x_ref.shape[2]
    h = out_ref.shape[2]

    # One large-M matmul for the whole tile of batch elements.
    x2d = x_ref[...].reshape(tb * BOARD, f)                       # (TB*64, F)
    proj = jnp.dot(x2d, w_ref[...], preferred_element_type=jnp.float32)

    # Add (bias + positional embedding) for squares 1..64, per batch element.
    body = proj.reshape(tb, BOARD, h) + bias_pos_ref[...][None, :, :]

    # Two direct stores: no in-kernel concat / 65-row temporary.
    out_ref[:, 1:SEQ, :] = body.astype(out_ref.dtype)
    val = jnp.broadcast_to(val_row_ref[...][None, :, :], (tb, 1, h))
    out_ref[:, 0:1, :] = val.astype(out_ref.dtype)


def _pick_tb(batch, tb_max=8):
    """Largest divisor of batch <= tb_max that keeps >= 2 grid steps (when possible)."""
    best = 1
    for tb in range(1, min(batch, tb_max) + 1):
        if batch % tb == 0 and (batch // tb >= 2 or batch == 1):
            best = tb
    return best


def board_embedding(x, w, b, val_token, pos_embed):
    """x: (B, 64*F) or (B, 64, F) float32 -> (B, 65, H) float32."""
    B = x.shape[0]
    x = x.reshape(B, BOARD, -1)
    F = x.shape[2]
    H = w.shape[1]

    # Batch-invariant precompute, hoisted out of the kernel (free in XLA).
    bias_pos = (b.reshape(1, H) + pos_embed[1:SEQ]).astype(jnp.float32)   # (64, H)
    val_row = (val_token.reshape(1, H) + pos_embed[0:1]).astype(jnp.float32)  # (1, H)

    tb = _pick_tb(B)
    grid = (B // tb,)

    itemsize = 4
    cost = pl.CostEstimate(
        flops=2 * B * BOARD * F * H,
        transcendentals=0,
        bytes_accessed=(x.size + w.size + bias_pos.size + val_row.size
                        + B * SEQ * H) * itemsize,
    )

    return pl.pallas_call(
        board_embed_kernel,
        out_shape=jax.ShapeDtypeStruct((B, SEQ, H), jnp.float32),
        grid_spec=pltpu.PrefetchScalarGridSpec(
            num_scalar_prefetch=0,
            grid=grid,
            in_specs=[
                pl.BlockSpec((tb, BOARD, F), lambda i: (i, 0, 0)),
                # Invariant blocks: constant index maps -> kept resident, no re-DMA.
                pl.BlockSpec((F, H), lambda i: (0, 0)),
                pl.BlockSpec((BOARD, H), lambda i: (0, 0)),
                pl.BlockSpec((1, H), lambda i: (0, 0)),
            ],
            out_specs=pl.BlockSpec((tb, SEQ, H), lambda i: (i, 0, 0)),
        ),
        compiler_params=pltpu.CompilerParams(
            dimension_semantics=("parallel",)),
        cost_estimate=cost,
    )(x, w, bias_pos, val_row)


def reference(x, w, b, val_token, pos_embed):
    B = x.shape[0]
    H = w.shape[1]
    xb = x.reshape(B, BOARD, -1)
    proj = jnp.einsum("bsf,fh->bsh", xb, w) + b.reshape(1, 1, H)   # (B, 64, H)
    val = jnp.broadcast_to(val_token.reshape(1, 1, H), (B, 1, H))  # (B, 1, H)
    seq = jnp.concatenate([val, proj], axis=1)                     # (B, 65, H)
    return seq + pos_embed[None]                                   # pos ids 0..64


if __name__ == "__main__":
    # Small config: feature_dim F = 16, embed_dim H = 32, batch B = 8
    # (B = 8 exercises the batched path: TB = 4, grid = (2,)).
    B, F, H = 8, 16, 32
    key = jax.random.PRNGKey(0)
    kx, kw, kb, kv, kp = jax.random.split(key, 5)

    # Input given flattened as (B, 64*F) to mirror the PyTorch x.view(B, 64, F).
    x = jax.random.normal(kx, (B, BOARD * F), dtype=jnp.float32)

    # Deterministic synthetic parameters (shapes match nn.Linear(F, H),
    # val_token (1, 1, H) stored as (1, H), nn.Embedding(65, H)).
    w = jax.random.normal(kw, (F, H), dtype=jnp.float32) * (1.0 / jnp.sqrt(F))
    b = jax.random.normal(kb, (1, H), dtype=jnp.float32) * 0.01
    val_token = jax.random.truncated_normal(kv, -2.0, 2.0, (1, H), jnp.float32) * 0.02
    pos_embed = jax.random.normal(kp, (SEQ, H), dtype=jnp.float32)

    out = board_embedding(x, w, b, val_token, pos_embed)
    out = jax.block_until_ready(out)

    ref = reference(x, w, b, val_token, pos_embed)
    assert out.shape == (B, SEQ, H), out.shape
    assert jnp.allclose(out, ref, atol=1e-5, rtol=1e-5), "mismatch vs reference"
    print("KERNEL_OK")
</pallas_src>

<mosaic_0001>
module attributes {stable_mosaic.version = 11 : i64} {
  func.func @board_embed_kernel(%arg0: i32, %arg1: memref<4x64x16xf32, #tpu.memory_space<vmem>>, %arg2: memref<16x32xf32, #tpu.memory_space<vmem>>, %arg3: memref<64x32xf32, #tpu.memory_space<vmem>>, %arg4: memref<1x32xf32, #tpu.memory_space<vmem>>, %arg5: memref<4x65x32xf32, #tpu.memory_space<vmem>>) attributes {dimension_semantics = [#tpu.dimension_semantics<parallel>], iteration_bounds = array<i64: 2>, scalar_prefetch = 0 : i64, scratch_operands = 0 : i64, tpu.core_type = #tpu.core_type<tc>, window_params = [{transform_indices = @transform_0, window_bounds = array<i64: 4, 64, 16>}, {pipeline_mode = #tpu.pipeline_mode<synchronous>, transform_indices = @transform_1, window_bounds = array<i64: 16, 32>}, {pipeline_mode = #tpu.pipeline_mode<synchronous>, transform_indices = @transform_2, window_bounds = array<i64: 64, 32>}, {pipeline_mode = #tpu.pipeline_mode<synchronous>, transform_indices = @transform_3, window_bounds = array<i64: 1, 32>}, {transform_indices = @transform_4, window_bounds = array<i64: 4, 65, 32>}]} {
    %c0 = arith.constant 0 : index
    %c0_0 = arith.constant 0 : index
    %c0_1 = arith.constant 0 : index
    %0 = vector.load %arg1[%c0, %c0_0, %c0_1] : memref<4x64x16xf32, #tpu.memory_space<vmem>>, vector<4x64x16xf32>
    %1 = vector.shape_cast %0 : vector<4x64x16xf32> to vector<256x16xf32>
    %c0_2 = arith.constant 0 : index
    %c0_3 = arith.constant 0 : index
    %2 = vector.load %arg2[%c0_2, %c0_3] : memref<16x32xf32, #tpu.memory_space<vmem>>, vector<16x32xf32>
    %cst = arith.constant dense<0.000000e+00> : vector<256x32xf32>
    %3 = tpu.matmul %1, %2, %cst {dimension_numbers = #tpu.dot_dimension_numbers<[1], [0], [0], [1], [0, 0, 1, 1], [], []>} : vector<256x16xf32>, vector<16x32xf32>, vector<256x32xf32> -> vector<256x32xf32>
    %4 = vector.shape_cast %3 : vector<256x32xf32> to vector<4x64x32xf32>
    %c0_4 = arith.constant 0 : index
    %c0_5 = arith.constant 0 : index
    %5 = vector.load %arg3[%c0_4, %c0_5] : memref<64x32xf32, #tpu.memory_space<vmem>>, vector<64x32xf32>
    %6 = vector.shape_cast %5 : vector<64x32xf32> to vector<1x64x32xf32>
    %7 = vector.broadcast %6 : vector<1x64x32xf32> to vector<4x64x32xf32>
    %8 = arith.addf %4, %7 : vector<4x64x32xf32>
    %c0_6 = arith.constant 0 : index
    %c1 = arith.constant 1 : index
    %c0_7 = arith.constant 0 : index
    %9 = vector.load %arg5[%c0_6, %c1, %c0_7] : memref<4x65x32xf32, #tpu.memory_space<vmem>>, vector<4x64x32xf32>
    tpu.vector_store %arg5[%c0_6, %c1, %c0_7], %8 {strides = array<i32>} : memref<4x65x32xf32, #tpu.memory_space<vmem>>, vector<4x64x32xf32>,
    %c0_8 = arith.constant 0 : index
    %c0_9 = arith.constant 0 : index
    %10 = vector.load %arg4[%c0_8, %c0_9] : memref<1x32xf32, #tpu.memory_space<vmem>>, vector<1x32xf32>
    %11 = vector.shape_cast %10 : vector<1x32xf32> to vector<1x1x32xf32>
    %12 = vector.shape_cast %11 : vector<1x1x32xf32> to vector<1x1x32xf32>
    %13 = vector.broadcast %12 : vector<1x1x32xf32> to vector<4x1x32xf32>
    %c0_10 = arith.constant 0 : index
    %c0_11 = arith.constant 0 : index
    %c0_12 = arith.constant 0 : index
    %14 = vector.load %arg5[%c0_10, %c0_11, %c0_12] : memref<4x65x32xf32, #tpu.memory_space<vmem>>, vector<4x1x32xf32>
    tpu.vector_store %arg5[%c0_10, %c0_11, %c0_12], %13 {strides = array<i32>} : memref<4x65x32xf32, #tpu.memory_space<vmem>>, vector<4x1x32xf32>,
    return
  }
  func.func @transform_0(%arg0: i32) -> (i32, i32, i32) {
    %c0_i32 = arith.constant 0 : i32
    %c0_i32_0 = arith.constant 0 : i32
    %c0_i32_1 = arith.constant 0 : i32
    return %arg0, %c0_i32, %c0_i32_0 : i32, i32, i32
  }
  func.func @transform_1(%arg0: i32) -> (i32, i32) {
    %c0_i32 = arith.constant 0 : i32
    %c0_i32_0 = arith.constant 0 : i32
    %c0_i32_1 = arith.constant 0 : i32
    return %c0_i32, %c0_i32_0 : i32, i32
  }
  func.func @transform_2(%arg0: i32) -> (i32, i32) {
    %c0_i32 = arith.constant 0 : i32
    %c0_i32_0 = arith.constant 0 : i32
    %c0_i32_1 = arith.constant 0 : i32
    return %c0_i32, %c0_i32_0 : i32, i32
  }
  func.func @transform_3(%arg0: i32) -> (i32, i32) {
    %c0_i32 = arith.constant 0 : i32
    %c0_i32_0 = arith.constant 0 : i32
    %c0_i32_1 = arith.constant 0 : i32
    return %c0_i32, %c0_i32_0 : i32, i32
  }
  func.func @transform_4(%arg0: i32) -> (i32, i32, i32) {
    %c0_i32 = arith.constant 0 : i32
    %c0_i32_0 = arith.constant 0 : i32
    %c0_i32_1 = arith.constant 0 : i32
    return %arg0, %c0_i32, %c0_i32_0 : i32, i32, i32
  }
}

</mosaic_0001>

<bundles_post_ra>
// kernel: tpu_custom_call.1
= control target key start
LH: loop header
LB: loop body
LE: loop exit
PB: predicated region body
PF: predicated region fallthrough
CT: control target
= control target key end

     0   :  { %s680_s15 = smov 0   ;;  %s874_s0 = inlined_call_operand.vmem [shape: f32[8,64,16], index: 0, kind: input, shape index: {}]   ;;  %s875_s1 = inlined_call_operand.vmem [shape: f32[16,32], index: 1, kind: input, shape index: {}]   ;;  %s876_s2 = inlined_call_operand.vmem [shape: f32[64,32], index: 2, kind: input, shape index: {}]   ;;  %s877_s3 = inlined_call_operand.vmem [shape: f32[1,32], index: 3, kind: input, shape index: {}]   ;;  %s878_s4 = inlined_call_operand.vmem [shape: f32[8,65,32], index: 4, kind: output, shape index: {}]  }
   0x1 LB: > { %s587_s16 = sadd.s32 4294967295, %s653_s15   ;;  %p591_p0 = scmp.ge.s32.totalorder %s653_s15, 1  ;;  %s653_s15 = sphi %s680_s15, %s14_s15  }
   0x2   : > { %p164_p1 = scmp.lt.s32.totalorder %s653_s15, 3 }
   0x4   : > { %p165_p2 = pnand %p591_p0, %p164_p1 }
   0x5   : > { %s592_s21 = sshll.u32 (!%p165_p2), %s587_s16, 2 }
   0x6   : > { %168 = sbr.rel (%p165_p2) target bundleno = 208 (0xd0), region = 36  ;;  %p193_p3 = scmp.lt.s32.totalorder (!%p165_p2), %s592_s21, 7 }
   0xb   : > { %v239_v0 = vld [vmem:[%s875_s1 + $0x8] sm:$0xff]  ;;  %v238_v1 = vld [vmem:[%s875_s1] sm:$0xff]  ;;  %s880_s21 = smov (!%p193_p3, %s592_s21), 7  ;;  %vm240_vm0 = vcmask 130048   ;;  %vm490_vm1 = vcmask 261120   ;;  %v452_v52 = vld [vmem:[%s876_s2 + $0x10] sm:$0xff] }
   0xc   : > { %633 = vmatpush.msra.mxu2 %v239_v0  ;;  %634 = vmatpush.msra.mxu3 %v239_v0  ;;  %s631_s22 = sshll.u32 %s880_s21, 6  ;;  %s638_s26 = smul.u32 72, %s880_s21  ;;  %v450_v34 = vld [vmem:[%s876_s2] sm:$0xff]  ;;  %v451_v43 = vld [vmem:[%s876_s2 + $0x8] sm:$0xff]  ;;  %v453_v61 = vld [vmem:[%s876_s2 + $0x18] sm:$0xff]  ;;  %vm524_vm2 = vcmask 253952  }
   0xd   : > { %351 = vmatpush.msra.mxu0 %v239_v0  ;;  %632 = vmatpush.msra.mxu1 %v239_v0  ;;  %s700_s25 = scalar_lea.vmem %s874_s0, %s631_s22 }
   0xe   : > { %636 = vmatpush.msra.mxu2 %v238_v1  ;;  %637 = vmatpush.msra.mxu3 %v238_v1  ;;  %v222_v2 = vld [vmem:[%s700_s25 + $0x80] sm:$0xff]  ;;  %v223_v6 = vld [vmem:[%s700_s25 + $0x88] sm:$0xff]  ;;  %v224_v10 = vld [vmem:[%s700_s25 + $0x90] sm:$0xff]  ;;  %s773_s5 = scalar_lea.vmem %s878_s4, %s638_s26 }
   0xf   : > { %352 = vmatpush.msra.mxu0 %v238_v1  ;;  %635 = vmatpush.msra.mxu1 %v238_v1  ;;  %v230_v3 = vld [vmem:[%s700_s25 + $0xc0] sm:$0xff]  ;;  %v231_v7 = vld [vmem:[%s700_s25 + $0xc8] sm:$0xff]  ;;  %v232_v11 = vld [vmem:[%s700_s25 + $0xd0] sm:$0xff] }
  0x10   : > { %v206_v4 = vld [vmem:[%s700_s25] sm:$0xff]  ;;  %613 = vmatmul.msk.f32.vlgmr.msra.gmra.mxu2 %vm240_vm0, %v222_v2  ;;  %621 = vmatmul.msk.f32.vlgmr.msra.gmra.mxu3 %vm240_vm0, %v230_v3  ;;  %v207_v8 = vld [vmem:[%s700_s25 + $0x8] sm:$0xff]  ;;  %v208_v12 = vld [vmem:[%s700_s25 + $0x10] sm:$0xff] }
  0x11   : > { %v214_v5 = vld [vmem:[%s700_s25 + $0x40] sm:$0xff]  ;;  %597 = vmatmul.msk.f32.vlgmr.msra.gmra.mxu0 %vm240_vm0, %v206_v4  ;;  %v215_v9 = vld [vmem:[%s700_s25 + $0x48] sm:$0xff]  ;;  %v216_v13 = vld [vmem:[%s700_s25 + $0x50] sm:$0xff] }
  0x12   : > { %605 = vmatmul.msk.f32.vlgmr.msra.gmra.mxu1 %vm240_vm0, %v214_v5  ;;  %v225_v14 = vld [vmem:[%s700_s25 + $0x98] sm:$0xff]  ;;  %v226_v18 = vld [vmem:[%s700_s25 + $0xa0] sm:$0xff]  ;;  %v227_v22 = vld [vmem:[%s700_s25 + $0xa8] sm:$0xff] }
  0x13   : > { %v233_v15 = vld [vmem:[%s700_s25 + $0xd8] sm:$0xff]  ;;  %v234_v19 = vld [vmem:[%s700_s25 + $0xe0] sm:$0xff]  ;;  %v235_v23 = vld [vmem:[%s700_s25 + $0xe8] sm:$0xff] }
  0x14   : > { %v209_v16 = vld [vmem:[%s700_s25 + $0x18] sm:$0xff]  ;;  %v210_v20 = vld [vmem:[%s700_s25 + $0x20] sm:$0xff]  ;;  %v211_v24 = vld [vmem:[%s700_s25 + $0x28] sm:$0xff] }
  0x15   : > { %v217_v17 = vld [vmem:[%s700_s25 + $0x58] sm:$0xff]  ;;  %v218_v21 = vld [vmem:[%s700_s25 + $0x60] sm:$0xff]  ;;  %v219_v25 = vld [vmem:[%s700_s25 + $0x68] sm:$0xff] }
  0x16   : > { %v228_v26 = vld [vmem:[%s700_s25 + $0xb0] sm:$0xff]  ;;  %v229_v30 = vld [vmem:[%s700_s25 + $0xb8] sm:$0xff]  ;;  %v523_v4 = vld [vmem:[%s877_s3] sm:$0x1] }
  0x17   : > { %v236_v27 = vld [vmem:[%s700_s25 + $0xf0] sm:$0xff]  ;;  %v237_v31 = vld [vmem:[%s700_s25 + $0xf8] sm:$0xff]  ;;  %525 = vst.msk [vmem:[%s773_s5] sm:$0x1] %vm524_vm2, %v523_v4 }
  0x18   : > { %614 = vmatmul.msk.f32.gmra.mxu2 %vm240_vm0, %v223_v6  ;;  %622 = vmatmul.msk.f32.gmra.mxu3 %vm240_vm0, %v231_v7  ;;  %v212_v28 = vld [vmem:[%s700_s25 + $0x30] sm:$0xff]  ;;  %v213_v32 = vld [vmem:[%s700_s25 + $0x38] sm:$0xff]  ;;  %v454_v7 = vld [vmem:[%s876_s2 + $0x20] sm:$0xff]  ;;  %526 = vst.msk [vmem:[%s773_s5 + $0x48] sm:$0x1] %vm524_vm2, %v523_v4 }
  0x19   : > { %598 = vmatmul.msk.f32.gmra.mxu0 %vm240_vm0, %v207_v8  ;;  %v220_v29 = vld [vmem:[%s700_s25 + $0x70] sm:$0xff]  ;;  %v221_v33 = vld [vmem:[%s700_s25 + $0x78] sm:$0xff]  ;;  %527 = vst.msk [vmem:[%s773_s5 + $0x90] sm:$0x1] %vm524_vm2, %v523_v4 }
  0x1a   : > { %606 = vmatmul.msk.f32.gmra.mxu1 %vm240_vm0, %v215_v9  ;;  %528 = vst.msk [vmem:[%s773_s5 + $0xd8] sm:$0x1] %vm524_vm2, %v523_v4 }
  0x20   : > { %615 = vmatmul.msk.f32.gmra.mxu2 %vm240_vm0, %v224_v10  ;;  %623 = vmatmul.msk.f32.gmra.mxu3 %vm240_vm0, %v232_v11 }
  0x21   : > { %599 = vmatmul.msk.f32.gmra.mxu0 %vm240_vm0, %v208_v12 }
  0x22   : > { %607 = vmatmul.msk.f32.gmra.mxu1 %vm240_vm0, %v216_v13 }
  0x28   : > { %616 = vmatmul.msk.f32.gmra.mxu2 %vm240_vm0, %v225_v14  ;;  %624 = vmatmul.msk.f32.gmra.mxu3 %vm240_vm0, %v233_v15 }
  0x29   : > { %600 = vmatmul.msk.f32.gmra.mxu0 %vm240_vm0, %v209_v16  ;;  %v455_v16 = vld [vmem:[%s876_s2 + $0x28] sm:$0xff] }
  0x2a   : > { %608 = vmatmul.msk.f32.gmra.mxu1 %vm240_vm0, %v217_v17 }
  0x30   : > { %617 = vmatmul.msk.f32.gmra.mxu2 %vm240_vm0, %v226_v18  ;;  %625 = vmatmul.msk.f32.gmra.mxu3 %vm240_vm0, %v234_v19 }
  0x31   : > { %601 = vmatmul.msk.f32.gmra.mxu0 %vm240_vm0, %v210_v20 }
  0x32   : > { %609 = vmatmul.msk.f32.gmra.mxu1 %vm240_vm0, %v218_v21 }
  0x38   : > { %618 = vmatmul.msk.f32.gmra.mxu2 %vm240_vm0, %v227_v22  ;;  %626 = vmatmul.msk.f32.gmra.mxu3 %vm240_vm0, %v235_v23 }
  0x39   : > { %602 = vmatmul.msk.f32.gmra.mxu0 %vm240_vm0, %v211_v24 }
  0x3a   : > { %610 = vmatmul.msk.f32.gmra.mxu1 %vm240_vm0, %v219_v25  ;;  %v456_v25 = vld [vmem:[%s876_s2 + $0x30] sm:$0xff] }
  0x40   : > { %619 = vmatmul.msk.f32.gmra.mxu2 %vm240_vm0, %v228_v26  ;;  %627 = vmatmul.msk.f32.gmra.mxu3 %vm240_vm0, %v236_v27 }
  0x41   : > { %603 = vmatmul.msk.f32.gmra.mxu0 %vm240_vm0, %v212_v28 }
  0x42   : > { %611 = vmatmul.msk.f32.gmra.mxu1 %vm240_vm0, %v220_v29 }
  0x48   : > { %620 = vmatmul.msk.f32.gmra.mxu2 %vm240_vm0, %v229_v30  ;;  %628 = vmatmul.msk.f32.gmra.mxu3 %vm240_vm0, %v237_v31 }
  0x49   : > { %604 = vmatmul.msk.f32.gmra.mxu0 %vm240_vm0, %v213_v32 }
  0x4a   : > { %612 = vmatmul.msk.f32.gmra.mxu1 %vm240_vm0, %v221_v33 }
  0x8e   : > { %v354_v35 = vpop.f32.mrf.mxu0 }
  0x8f   : > { %v378_v36 = vpop.f32.mrf.mxu1  ;;  %v458_v37 = vadd.f32 %v450_v34, %v354_v35 }
  0x90   : > { %v466_v38 = vadd.f32 %v450_v34, %v378_v36 }
  0x91   : > { %491 = vst.msk [vmem:[%s773_s5 + $0x1] sm:$0xff] %vm490_vm1, %v458_v37 }
  0x92   : > { %499 = vst.msk [vmem:[%s773_s5 + $0x49] sm:$0xff] %vm490_vm1, %v466_v38 }
  0x93   : > { %v402_v39 = vpop.f32.mrf.mxu2  ;;  %v426_v40 = vpop.f32.mrf.mxu3 }
  0x94   : > { %v474_v41 = vadd.f32 %v450_v34, %v402_v39  ;;  %v482_v42 = vadd.f32 %v450_v34, %v426_v40  ;;  %v457_v34 = vld [vmem:[%s876_s2 + $0x38] sm:$0xff] }
  0x96   : > { %507 = vst.msk [vmem:[%s773_s5 + $0x91] sm:$0xff] %vm490_vm1, %v474_v41  ;;  %v357_v44 = vpop.f32.mrf.mxu0 }
  0x97   : > { %v381_v45 = vpop.f32.mrf.mxu1  ;;  %515 = vst.msk [vmem:[%s773_s5 + $0xd9] sm:$0xff] %vm490_vm1, %v482_v42  ;;  %v459_v46 = vadd.f32 %v451_v43, %v357_v44 }
  0x98   : > { %v467_v47 = vadd.f32 %v451_v43, %v381_v45 }
  0x99   : > { %492 = vst.msk [vmem:[%s773_s5 + $0x9] sm:$0xff] %vm490_vm1, %v459_v46 }
  0x9a   : > { %500 = vst.msk [vmem:[%s773_s5 + $0x51] sm:$0xff] %vm490_vm1, %v467_v47 }
  0x9b   : > { %v405_v48 = vpop.f32.mrf.mxu2  ;;  %v429_v49 = vpop.f32.mrf.mxu3 }
  0x9c   : > { %v475_v50 = vadd.f32 %v451_v43, %v405_v48  ;;  %v483_v51 = vadd.f32 %v451_v43, %v429_v49 }
  0x9e   : > { %508 = vst.msk [vmem:[%s773_s5 + $0x99] sm:$0xff] %vm490_vm1, %v475_v50  ;;  %v360_v53 = vpop.f32.mrf.mxu0 }
  0x9f   : > { %v384_v54 = vpop.f32.mrf.mxu1  ;;  %516 = vst.msk [vmem:[%s773_s5 + $0xe1] sm:$0xff] %vm490_vm1, %v483_v51  ;;  %v460_v55 = vadd.f32 %v452_v52, %v360_v53 }
  0xa0   : > { %v468_v56 = vadd.f32 %v452_v52, %v384_v54 }
  0xa1   : > { %493 = vst.msk [vmem:[%s773_s5 + $0x11] sm:$0xff] %vm490_vm1, %v460_v55 }
  0xa2   : > { %501 = vst.msk [vmem:[%s773_s5 + $0x59] sm:$0xff] %vm490_vm1, %v468_v56 }
  0xa3   : > { %v408_v57 = vpop.f32.mrf.mxu2  ;;  %v432_v58 = vpop.f32.mrf.mxu3 }
  0xa4   : > { %v476_v59 = vadd.f32 %v452_v52, %v408_v57  ;;  %v484_v60 = vadd.f32 %v452_v52, %v432_v58 }
  0xa6   : > { %509 = vst.msk [vmem:[%s773_s5 + $0xa1] sm:$0xff] %vm490_vm1, %v476_v59  ;;  %v363_v62 = vpop.f32.mrf.mxu0 }
  0xa7   : > { %v387_v63 = vpop.f32.mrf.mxu1  ;;  %517 = vst.msk [vmem:[%s773_s5 + $0xe9] sm:$0xff] %vm490_vm1, %v484_v60  ;;  %v461_v0 = vadd.f32 %v453_v61, %v363_v62 }
  0xa8   : > { %v469_v1 = vadd.f32 %v453_v61, %v387_v63 }
  0xa9   : > { %494 = vst.msk [vmem:[%s773_s5 + $0x19] sm:$0xff] %vm490_vm1, %v461_v0 }
  0xaa   : > { %502 = vst.msk [vmem:[%s773_s5 + $0x61] sm:$0xff] %vm490_vm1, %v469_v1 }
  0xab   : > { %v411_v2 = vpop.f32.mrf.mxu2  ;;  %v435_v3 = vpop.f32.mrf.mxu3 }
  0xac   : > { %v477_v5 = vadd.f32 %v453_v61, %v411_v2  ;;  %v485_v6 = vadd.f32 %v453_v61, %v435_v3 }
  0xae   : > { %510 = vst.msk [vmem:[%s773_s5 + $0xa9] sm:$0xff] %vm490_vm1, %v477_v5  ;;  %v366_v8 = vpop.f32.mrf.mxu0 }
  0xaf   : > { %v390_v9 = vpop.f32.mrf.mxu1  ;;  %518 = vst.msk [vmem:[%s773_s5 + $0xf1] sm:$0xff] %vm490_vm1, %v485_v6  ;;  %v462_v10 = vadd.f32 %v454_v7, %v366_v8 }
  0xb0   : > { %v470_v11 = vadd.f32 %v454_v7, %v390_v9 }
  0xb1   : > { %495 = vst.msk [vmem:[%s773_s5 + $0x21] sm:$0xff] %vm490_vm1, %v462_v10 }
  0xb2   : > { %503 = vst.msk [vmem:[%s773_s5 + $0x69] sm:$0xff] %vm490_vm1, %v470_v11 }
  0xb3   : > { %v414_v12 = vpop.f32.mrf.mxu2  ;;  %v438_v13 = vpop.f32.mrf.mxu3 }
  0xb4   : > { %v478_v14 = vadd.f32 %v454_v7, %v414_v12  ;;  %v486_v15 = vadd.f32 %v454_v7, %v438_v13 }
  0xb6   : > { %511 = vst.msk [vmem:[%s773_s5 + $0xb1] sm:$0xff] %vm490_vm1, %v478_v14  ;;  %v369_v17 = vpop.f32.mrf.mxu0 }
  0xb7   : > { %v393_v18 = vpop.f32.mrf.mxu1  ;;  %519 = vst.msk [vmem:[%s773_s5 + $0xf9] sm:$0xff] %vm490_vm1, %v486_v15  ;;  %v463_v19 = vadd.f32 %v455_v16, %v369_v17 }
  0xb8   : > { %v471_v20 = vadd.f32 %v455_v16, %v393_v18 }
  0xb9   : > { %496 = vst.msk [vmem:[%s773_s5 + $0x29] sm:$0xff] %vm490_vm1, %v463_v19 }
  0xba   : > { %504 = vst.msk [vmem:[%s773_s5 + $0x71] sm:$0xff] %vm490_vm1, %v471_v20 }
  0xbb   : > { %v417_v21 = vpop.f32.mrf.mxu2  ;;  %v441_v22 = vpop.f32.mrf.mxu3 }
  0xbc   : > { %v479_v23 = vadd.f32 %v455_v16, %v417_v21  ;;  %v487_v24 = vadd.f32 %v455_v16, %v441_v22 }
  0xbe   : > { %512 = vst.msk [vmem:[%s773_s5 + $0xb9] sm:$0xff] %vm490_vm1, %v479_v23  ;;  %v372_v26 = vpop.f32.mrf.mxu0 }
  0xbf   : > { %v396_v27 = vpop.f32.mrf.mxu1  ;;  %520 = vst.msk [vmem:[%s773_s5 + $0x101] sm:$0xff] %vm490_vm1, %v487_v24  ;;  %v464_v28 = vadd.f32 %v456_v25, %v372_v26 }
  0xc0   : > { %v472_v29 = vadd.f32 %v456_v25, %v396_v27 }
  0xc1   : > { %497 = vst.msk [vmem:[%s773_s5 + $0x31] sm:$0xff] %vm490_vm1, %v464_v28 }
  0xc2   : > { %505 = vst.msk [vmem:[%s773_s5 + $0x79] sm:$0xff] %vm490_vm1, %v472_v29 }
  0xc3   : > { %v420_v30 = vpop.f32.mrf.mxu2  ;;  %v444_v31 = vpop.f32.mrf.mxu3 }
  0xc4   : > { %v480_v32 = vadd.f32 %v456_v25, %v420_v30  ;;  %v488_v33 = vadd.f32 %v456_v25, %v444_v31 }
  0xc6   : > { %513 = vst.msk [vmem:[%s773_s5 + $0xc1] sm:$0xff] %vm490_vm1, %v480_v32  ;;  %v375_v35 = vpop.f32.mrf.mxu0 }
  0xc7   : > { %v399_v36 = vpop.f32.mrf.mxu1  ;;  %521 = vst.msk [vmem:[%s773_s5 + $0x109] sm:$0xff] %vm490_vm1, %v488_v33  ;;  %v465_v37 = vadd.f32 %v457_v34, %v375_v35 }
  0xc8   : > { %v473_v38 = vadd.f32 %v457_v34, %v399_v36 }
  0xc9   : > { %498 = vst.msk [vmem:[%s773_s5 + $0x39] sm:$0xff] %vm490_vm1, %v465_v37 }
  0xca   : > { %506 = vst.msk [vmem:[%s773_s5 + $0x81] sm:$0xff] %vm490_vm1, %v473_v38 }
  0xcb   : > { %v423_v39 = vpop.f32.mrf.mxu2  ;;  %v447_v40 = vpop.f32.mrf.mxu3 }
  0xcc   : > { %v481_v41 = vadd.f32 %v457_v34, %v423_v39  ;;  %v489_v42 = vadd.f32 %v457_v34, %v447_v40 }
  0xce   : > { %514 = vst.msk [vmem:[%s773_s5 + $0xc9] sm:$0xff] %vm490_vm1, %v481_v41 }
  0xcf   : > { %522 = vst.msk [vmem:[%s773_s5 + $0x111] sm:$0xff] %vm490_vm1, %v489_v42 }
  0xd0 PF: > { %s14_s15 = sadd.s32 1, %s653_s15  }
  0xd1   : > { %p11_p4 = scmp.ge.s32.totalorder %s14_s15, 4  }
  0xd3   :  { %13 = sbr.rel (!%p11_p4) target bundleno = 1 (0x1), region = 66 }

</bundles_post_ra>
